<compile_context>
chip_gen: v6e
topology: v6e:2x2x1
jax: 0.10.0
libtpu: 0.0.40
codegen_flags: <defaults>
</compile_context>

<pallas_src>
import math

import jax
import jax.numpy as jnp
from jax import lax
from jax.experimental import pallas as pl
from jax.experimental.pallas import tpu as pltpu

SUB_M = 128  # rows per in-kernel sub-tile; keeps h1 (SUB_M x 256 f32) within the vreg file


def qnet_kernel(x_ref, w1_ref, b1_ref, w2_ref, b2_ref, w3_ref, b3_ref, o_ref):
    """One batch tile of the 3-layer MLP. Weights stay resident across the grid.

    The tile is processed in SUB_M-row sub-tiles so each sub-tile's activations
    (h1: SUB_M x 256, h2: SUB_M x 128, f32) live in vregs for all three layers;
    the DMA tile stays large for HBM efficiency.
    """
    wdt = w1_ref.dtype  # f32 or bf16; only the MXU operands are cast.
    tb = x_ref.shape[0]
    sub = min(tb, SUB_M)
    n_sub = tb // sub

    def body(s, carry):
        r0 = pl.multiple_of(s * sub, sub)
        xs = x_ref[pl.ds(r0, sub), :]
        # fc1 + ReLU (MXU matmul, f32 accumulation; bias/ReLU on the VPU in f32)
        h1 = jnp.dot(xs.astype(wdt), w1_ref[...], preferred_element_type=jnp.float32)
        h1 = jnp.maximum(h1 + b1_ref[...], 0.0)
        # fc2 + ReLU
        h2 = jnp.dot(h1.astype(wdt), w2_ref[...], preferred_element_type=jnp.float32)
        h2 = jnp.maximum(h2 + b2_ref[...], 0.0)
        # fc3 (linear head; output block is the true output width -> masked vst,
        # but 16x less HBM writeback than a 128-lane padded slab for out=8)
        out = jnp.dot(h2.astype(wdt), w3_ref[...], preferred_element_type=jnp.float32)
        o_ref[pl.ds(r0, sub), :] = (out + b3_ref[...]).astype(o_ref.dtype)
        return carry

    if n_sub == 1:
        body(0, None)
    else:
        lax.fori_loop(0, n_sub, body, None, unroll=True)


def _choose_batch_tile(batch):
    """Big tiles amortize the ~0.35us per-grid-step overhead; the 2*tb cap keeps the
    grid at >= 2 steps when the batch allows so v7x's two TensorCores both get work
    (harmless extra step on single-TC v5e/v6e). Same ladder on all generations."""
    for tb in (2048, 1024, 512, 256, 128):
        if batch >= 2 * tb:
            return tb
    if batch >= 128:
        return 128
    return max(8, ((batch + 7) // 8) * 8)  # tiny batch: single 8-aligned tile


def qnetwork_forward(x, params, output_size, *, block_b=None):
    """x: (B, input_size) f32 -> (B, output_size) f32.

    params = (w1, b1, w2, b2, w3, b3): weights stored (in, out) (bf16 by default,
    f32 supported), biases (1, out) f32. Pass block_b for fixed inference batches
    to avoid the jnp.pad copy / shape churn entirely.
    """
    w1, b1, w2, b2, w3, b3 = params
    batch, in_size = x.shape
    h1_size = w1.shape[1]
    h2_size = w2.shape[1]
    assert w3.shape[1] == output_size

    tb = block_b if block_b is not None else _choose_batch_tile(batch)
    grid_b = pl.cdiv(batch, tb)
    batch_pad = grid_b * tb
    if batch_pad != batch:
        x = jnp.pad(x, ((0, batch_pad - batch), (0, 0)))

    w_bytes = sum(int(w.size) * w.dtype.itemsize for w in (w1, w2, w3))
    b_bytes = sum(int(b.size) * 4 for b in (b1, b2, b3))
    cost = pl.CostEstimate(
        flops=2 * batch_pad * (in_size * h1_size + h1_size * h2_size + h2_size * output_size),
        transcendentals=0,
        bytes_accessed=batch_pad * in_size * 4 + w_bytes + b_bytes + batch_pad * output_size * 4,
    )

    resident = lambda i: (0, 0)  # weights/biases: DMA once, stay in VMEM across the grid
    tiled = lambda i: (i, 0)     # x / out: double-buffered per batch tile

    out = pl.pallas_call(
        qnet_kernel,
        out_shape=jax.ShapeDtypeStruct((batch_pad, output_size), jnp.float32),
        grid=(grid_b,),
        in_specs=[
            pl.BlockSpec((tb, in_size), tiled),
            pl.BlockSpec((in_size, h1_size), resident),
            pl.BlockSpec((1, h1_size), resident),
            pl.BlockSpec((h1_size, h2_size), resident),
            pl.BlockSpec((1, h2_size), resident),
            pl.BlockSpec((h2_size, output_size), resident),
            pl.BlockSpec((1, output_size), resident),
        ],
        # Last block dim = output_size equals the full array dim -> legal despite <128.
        out_specs=pl.BlockSpec((tb, output_size), tiled),
        compiler_params=pltpu.CompilerParams(
            dimension_semantics=("parallel",),  # batch tiles split across TCs on v7x
        ),
        cost_estimate=cost,
    )(x, w1, b1, w2, b2, w3, b3)
    if batch_pad != batch:
        out = out[:batch]
    return out


def init_params(key, input_size, output_size, weight_dtype=jnp.bfloat16):
    """Deterministic init mirroring the PyTorch module's __init__.

    fc1/fc2 weights: kaiming_normal_ (nonlinearity='relu')   -> std = sqrt(2/fan_in)
    fc3 weight:      kaiming_normal_ (nonlinearity='linear') -> std = sqrt(1/fan_in)
    biases:          PyTorch Linear default U(-1/sqrt(fan_in), 1/sqrt(fan_in))
    Weights are stored transposed (in, out) for the x @ W layout and default to bf16
    (native MXU dtype; accumulation stays f32). Biases stay f32 (VPU path).
    """
    k = jax.random.split(key, 6)

    def kaiming_w(kk, fan_in, fan_out, gain):
        std = gain / math.sqrt(fan_in)
        return jax.random.normal(kk, (fan_in, fan_out), jnp.float32) * std

    def uniform_b(kk, fan_in, fan_out):
        bound = 1.0 / math.sqrt(fan_in)
        return jax.random.uniform(kk, (1, fan_out), jnp.float32, -bound, bound)

    w1 = kaiming_w(k[0], input_size, 256, math.sqrt(2.0))
    b1 = uniform_b(k[1], input_size, 256)
    w2 = kaiming_w(k[2], 256, 128, math.sqrt(2.0))
    b2 = uniform_b(k[3], 256, 128)
    w3 = kaiming_w(k[4], 128, output_size, 1.0)
    b3 = uniform_b(k[5], 128, output_size)
    if weight_dtype != jnp.float32:
        w1, w2, w3 = (w.astype(weight_dtype) for w in (w1, w2, w3))
    return (w1, b1, w2, b2, w3, b3)


def cast_weights(params, dtype):
    """Cast only the weights (MXU operands); biases / VPU path stay f32."""
    w1, b1, w2, b2, w3, b3 = params
    return (w1.astype(dtype), b1, w2.astype(dtype), b2, w3.astype(dtype), b3)


def qnetwork_ref(x, params, output_size):
    """Pure-JAX reference mirroring the kernel's cast/accumulation behavior."""
    w1, b1, w2, b2, w3, b3 = params
    wdt = w1.dtype
    h1 = jnp.maximum(jnp.dot(x.astype(wdt), w1, preferred_element_type=jnp.float32) + b1, 0.0)
    h2 = jnp.maximum(jnp.dot(h1.astype(wdt), w2, preferred_element_type=jnp.float32) + b2, 0.0)
    return jnp.dot(h2.astype(wdt), w3, preferred_element_type=jnp.float32) + b3


if __name__ == "__main__":
    key = jax.random.PRNGKey(0)
    k_param, k_x = jax.random.split(key)

    input_size = 32   # flattened observation vector
    output_size = 8   # number of discrete actions

    # 1) Default bf16 weights; batch=512 -> tb=256, grid=(2,) so the "parallel"
    #    (megacore) path is actually exercised and the kernel body sub-tiles.
    params = init_params(k_param, input_size, output_size)          # bf16 by default
    x_big = jax.random.normal(k_x, (512, input_size), jnp.float32)
    out = jax.block_until_ready(qnetwork_forward(x_big, params, output_size))
    ref = qnetwork_ref(x_big, params, output_size)
    assert out.shape == (512, output_size)
    assert jnp.allclose(out, ref, atol=2e-2, rtol=2e-2)

    # 2) Tiny ragged batch (exercises the batch-padding path; single 8-row tile).
    x_small = x_big[:6]
    out_s = jax.block_until_ready(qnetwork_forward(x_small, params, output_size))
    assert out_s.shape == (6, output_size)
    assert jnp.allclose(out_s, ref[:6], atol=2e-2, rtol=2e-2)

    # 3) f32 weight path (tight tolerance) + explicit block_b (no pad, grid=(4,)).
    params_f32 = init_params(k_param, input_size, output_size, weight_dtype=jnp.float32)
    out_f32 = jax.block_until_ready(
        qnetwork_forward(x_big, params_f32, output_size, block_b=128))
    ref_f32 = qnetwork_ref(x_big, params_f32, output_size)
    assert jnp.allclose(out_f32, ref_f32, atol=1e-4, rtol=1e-4)

    print("KERNEL_OK")
</pallas_src>

<mosaic_0001>
module attributes {stable_mosaic.version = 11 : i64} {
  func.func @qnet_kernel(%arg0: i32, %arg1: memref<256x32xf32, #tpu.memory_space<vmem>>, %arg2: memref<32x256xbf16, #tpu.memory_space<vmem>>, %arg3: memref<1x256xf32, #tpu.memory_space<vmem>>, %arg4: memref<256x128xbf16, #tpu.memory_space<vmem>>, %arg5: memref<1x128xf32, #tpu.memory_space<vmem>>, %arg6: memref<128x8xbf16, #tpu.memory_space<vmem>>, %arg7: memref<1x8xf32, #tpu.memory_space<vmem>>, %arg8: memref<256x8xf32, #tpu.memory_space<vmem>>) attributes {dimension_semantics = [#tpu.dimension_semantics<parallel>], iteration_bounds = array<i64: 2>, scalar_prefetch = 0 : i64, scratch_operands = 0 : i64, tpu.core_type = #tpu.core_type<tc>, window_params = [{transform_indices = @transform_0, window_bounds = array<i64: 256, 32>}, {pipeline_mode = #tpu.pipeline_mode<synchronous>, transform_indices = @transform_1, window_bounds = array<i64: 32, 256>}, {pipeline_mode = #tpu.pipeline_mode<synchronous>, transform_indices = @transform_2, window_bounds = array<i64: 1, 256>}, {pipeline_mode = #tpu.pipeline_mode<synchronous>, transform_indices = @transform_3, window_bounds = array<i64: 256, 128>}, {pipeline_mode = #tpu.pipeline_mode<synchronous>, transform_indices = @transform_4, window_bounds = array<i64: 1, 128>}, {pipeline_mode = #tpu.pipeline_mode<synchronous>, transform_indices = @transform_5, window_bounds = array<i64: 128, 8>}, {pipeline_mode = #tpu.pipeline_mode<synchronous>, transform_indices = @transform_6, window_bounds = array<i64: 1, 8>}, {transform_indices = @transform_7, window_bounds = array<i64: 256, 8>}]} {
    %c0_i32 = arith.constant 0 : i32
    %c128_i32 = arith.constant 128 : i32
    %0 = arith.muli %c0_i32, %c128_i32 : i32
    %1 = tpu.assume_multiple %0, 128 : i32
    %2 = arith.index_cast %1 : i32 to index
    %c0 = arith.constant 0 : index
    %3 = vector.load %arg1[%2, %c0] : memref<256x32xf32, #tpu.memory_space<vmem>>, vector<128x32xf32>
    %4 = arith.truncf %3 : vector<128x32xf32> to vector<128x32xbf16>
    %c0_0 = arith.constant 0 : index
    %c0_1 = arith.constant 0 : index
    %5 = vector.load %arg2[%c0_0, %c0_1] : memref<32x256xbf16, #tpu.memory_space<vmem>>, vector<32x256xbf16>
    %cst = arith.constant dense<0.000000e+00> : vector<128x256xf32>
    %6 = tpu.matmul %4, %5, %cst {dimension_numbers = #tpu.dot_dimension_numbers<[1], [0], [0], [1], [0, 0, 1, 1], [], []>} : vector<128x32xbf16>, vector<32x256xbf16>, vector<128x256xf32> -> vector<128x256xf32>
    %c0_2 = arith.constant 0 : index
    %c0_3 = arith.constant 0 : index
    %7 = vector.load %arg3[%c0_2, %c0_3] : memref<1x256xf32, #tpu.memory_space<vmem>>, vector<1x256xf32>
    %8 = vector.broadcast %7 : vector<1x256xf32> to vector<128x256xf32>
    %9 = arith.addf %6, %8 : vector<128x256xf32>
    %cst_4 = arith.constant 0.000000e+00 : f32
    %10 = vector.broadcast %cst_4 : f32 to vector<128x256xf32>
    %11 = arith.maximumf %9, %10 : vector<128x256xf32>
    %12 = arith.truncf %11 : vector<128x256xf32> to vector<128x256xbf16>
    %c0_5 = arith.constant 0 : index
    %c0_6 = arith.constant 0 : index
    %13 = vector.load %arg4[%c0_5, %c0_6] : memref<256x128xbf16, #tpu.memory_space<vmem>>, vector<256x128xbf16>
    %cst_7 = arith.constant dense<0.000000e+00> : vector<128x128xf32>
    %14 = tpu.matmul %12, %13, %cst_7 {dimension_numbers = #tpu.dot_dimension_numbers<[1], [0], [0], [1], [0, 0, 1, 1], [], []>} : vector<128x256xbf16>, vector<256x128xbf16>, vector<128x128xf32> -> vector<128x128xf32>
    %c0_8 = arith.constant 0 : index
    %c0_9 = arith.constant 0 : index
    %15 = vector.load %arg5[%c0_8, %c0_9] : memref<1x128xf32, #tpu.memory_space<vmem>>, vector<1x128xf32>
    %16 = vector.broadcast %15 : vector<1x128xf32> to vector<128x128xf32>
    %17 = arith.addf %14, %16 : vector<128x128xf32>
    %cst_10 = arith.constant 0.000000e+00 : f32
    %18 = vector.broadcast %cst_10 : f32 to vector<128x128xf32>
    %19 = arith.maximumf %17, %18 : vector<128x128xf32>
    %20 = arith.truncf %19 : vector<128x128xf32> to vector<128x128xbf16>
    %c0_11 = arith.constant 0 : index
    %c0_12 = arith.constant 0 : index
    %21 = vector.load %arg6[%c0_11, %c0_12] : memref<128x8xbf16, #tpu.memory_space<vmem>>, vector<128x8xbf16>
    %cst_13 = arith.constant dense<0.000000e+00> : vector<128x8xf32>
    %22 = tpu.matmul %20, %21, %cst_13 {dimension_numbers = #tpu.dot_dimension_numbers<[1], [0], [0], [1], [0, 0, 1, 1], [], []>} : vector<128x128xbf16>, vector<128x8xbf16>, vector<128x8xf32> -> vector<128x8xf32>
    %c0_14 = arith.constant 0 : index
    %c0_15 = arith.constant 0 : index
    %23 = vector.load %arg7[%c0_14, %c0_15] : memref<1x8xf32, #tpu.memory_space<vmem>>, vector<1x8xf32>
    %24 = vector.broadcast %23 : vector<1x8xf32> to vector<128x8xf32>
    %25 = arith.addf %22, %24 : vector<128x8xf32>
    %26 = arith.index_cast %1 : i32 to index
    %c0_16 = arith.constant 0 : index
    %27 = vector.load %arg8[%26, %c0_16] : memref<256x8xf32, #tpu.memory_space<vmem>>, vector<128x8xf32>
    tpu.vector_store %arg8[%26, %c0_16], %25 {strides = array<i32>} : memref<256x8xf32, #tpu.memory_space<vmem>>, vector<128x8xf32>,
    %c1_i32 = arith.constant 1 : i32
    %c128_i32_17 = arith.constant 128 : i32
    %28 = arith.muli %c1_i32, %c128_i32_17 : i32
    %29 = tpu.assume_multiple %28, 128 : i32
    %30 = arith.index_cast %29 : i32 to index
    %c0_18 = arith.constant 0 : index
    %31 = vector.load %arg1[%30, %c0_18] : memref<256x32xf32, #tpu.memory_space<vmem>>, vector<128x32xf32>
    %32 = arith.truncf %31 : vector<128x32xf32> to vector<128x32xbf16>
    %c0_19 = arith.constant 0 : index
    %c0_20 = arith.constant 0 : index
    %33 = vector.load %arg2[%c0_19, %c0_20] : memref<32x256xbf16, #tpu.memory_space<vmem>>, vector<32x256xbf16>
    %cst_21 = arith.constant dense<0.000000e+00> : vector<128x256xf32>
    %34 = tpu.matmul %32, %33, %cst_21 {dimension_numbers = #tpu.dot_dimension_numbers<[1], [0], [0], [1], [0, 0, 1, 1], [], []>} : vector<128x32xbf16>, vector<32x256xbf16>, vector<128x256xf32> -> vector<128x256xf32>
    %c0_22 = arith.constant 0 : index
    %c0_23 = arith.constant 0 : index
    %35 = vector.load %arg3[%c0_22, %c0_23] : memref<1x256xf32, #tpu.memory_space<vmem>>, vector<1x256xf32>
    %36 = vector.broadcast %35 : vector<1x256xf32> to vector<128x256xf32>
    %37 = arith.addf %34, %36 : vector<128x256xf32>
    %cst_24 = arith.constant 0.000000e+00 : f32
    %38 = vector.broadcast %cst_24 : f32 to vector<128x256xf32>
    %39 = arith.maximumf %37, %38 : vector<128x256xf32>
    %40 = arith.truncf %39 : vector<128x256xf32> to vector<128x256xbf16>
    %c0_25 = arith.constant 0 : index
    %c0_26 = arith.constant 0 : index
    %41 = vector.load %arg4[%c0_25, %c0_26] : memref<256x128xbf16, #tpu.memory_space<vmem>>, vector<256x128xbf16>
    %cst_27 = arith.constant dense<0.000000e+00> : vector<128x128xf32>
    %42 = tpu.matmul %40, %41, %cst_27 {dimension_numbers = #tpu.dot_dimension_numbers<[1], [0], [0], [1], [0, 0, 1, 1], [], []>} : vector<128x256xbf16>, vector<256x128xbf16>, vector<128x128xf32> -> vector<128x128xf32>
    %c0_28 = arith.constant 0 : index
    %c0_29 = arith.constant 0 : index
    %43 = vector.load %arg5[%c0_28, %c0_29] : memref<1x128xf32, #tpu.memory_space<vmem>>, vector<1x128xf32>
    %44 = vector.broadcast %43 : vector<1x128xf32> to vector<128x128xf32>
    %45 = arith.addf %42, %44 : vector<128x128xf32>
    %cst_30 = arith.constant 0.000000e+00 : f32
    %46 = vector.broadcast %cst_30 : f32 to vector<128x128xf32>
    %47 = arith.maximumf %45, %46 : vector<128x128xf32>
    %48 = arith.truncf %47 : vector<128x128xf32> to vector<128x128xbf16>
    %c0_31 = arith.constant 0 : index
    %c0_32 = arith.constant 0 : index
    %49 = vector.load %arg6[%c0_31, %c0_32] : memref<128x8xbf16, #tpu.memory_space<vmem>>, vector<128x8xbf16>
    %cst_33 = arith.constant dense<0.000000e+00> : vector<128x8xf32>
    %50 = tpu.matmul %48, %49, %cst_33 {dimension_numbers = #tpu.dot_dimension_numbers<[1], [0], [0], [1], [0, 0, 1, 1], [], []>} : vector<128x128xbf16>, vector<128x8xbf16>, vector<128x8xf32> -> vector<128x8xf32>
    %c0_34 = arith.constant 0 : index
    %c0_35 = arith.constant 0 : index
    %51 = vector.load %arg7[%c0_34, %c0_35] : memref<1x8xf32, #tpu.memory_space<vmem>>, vector<1x8xf32>
    %52 = vector.broadcast %51 : vector<1x8xf32> to vector<128x8xf32>
    %53 = arith.addf %50, %52 : vector<128x8xf32>
    %54 = arith.index_cast %29 : i32 to index
    %c0_36 = arith.constant 0 : index
    %55 = vector.load %arg8[%54, %c0_36] : memref<256x8xf32, #tpu.memory_space<vmem>>, vector<128x8xf32>
    tpu.vector_store %arg8[%54, %c0_36], %53 {strides = array<i32>} : memref<256x8xf32, #tpu.memory_space<vmem>>, vector<128x8xf32>,
    %c2_i32 = arith.constant 2 : i32
    return
  }
  func.func @transform_0(%arg0: i32) -> (i32, i32) {
    %c0_i32 = arith.constant 0 : i32
    %c0_i32_0 = arith.constant 0 : i32
    return %arg0, %c0_i32 : i32, i32
  }
  func.func @transform_1(%arg0: i32) -> (i32, i32) {
    %c0_i32 = arith.constant 0 : i32
    %c0_i32_0 = arith.constant 0 : i32
    %c0_i32_1 = arith.constant 0 : i32
    return %c0_i32, %c0_i32_0 : i32, i32
  }
  func.func @transform_2(%arg0: i32) -> (i32, i32) {
    %c0_i32 = arith.constant 0 : i32
    %c0_i32_0 = arith.constant 0 : i32
    %c0_i32_1 = arith.constant 0 : i32
    return %c0_i32, %c0_i32_0 : i32, i32
  }
  func.func @transform_3(%arg0: i32) -> (i32, i32) {
    %c0_i32 = arith.constant 0 : i32
    %c0_i32_0 = arith.constant 0 : i32
    %c0_i32_1 = arith.constant 0 : i32
    return %c0_i32, %c0_i32_0 : i32, i32
  }
  func.func @transform_4(%arg0: i32) -> (i32, i32) {
    %c0_i32 = arith.constant 0 : i32
    %c0_i32_0 = arith.constant 0 : i32
    %c0_i32_1 = arith.constant 0 : i32
    return %c0_i32, %c0_i32_0 : i32, i32
  }
  func.func @transform_5(%arg0: i32) -> (i32, i32) {
    %c0_i32 = arith.constant 0 : i32
    %c0_i32_0 = arith.constant 0 : i32
    %c0_i32_1 = arith.constant 0 : i32
    return %c0_i32, %c0_i32_0 : i32, i32
  }
  func.func @transform_6(%arg0: i32) -> (i32, i32) {
    %c0_i32 = arith.constant 0 : i32
    %c0_i32_0 = arith.constant 0 : i32
    %c0_i32_1 = arith.constant 0 : i32
    return %c0_i32, %c0_i32_0 : i32, i32
  }
  func.func @transform_7(%arg0: i32) -> (i32, i32) {
    %c0_i32 = arith.constant 0 : i32
    %c0_i32_0 = arith.constant 0 : i32
    return %arg0, %c0_i32 : i32, i32
  }
}

</mosaic_0001>

<bundles_post_ra>
// kernel: tpu_custom_call.1
= control target key start
LH: loop header
LB: loop body
LE: loop exit
PB: predicated region body
PF: predicated region fallthrough
CT: control target
= control target key end

     0   :  { %s2184_s24 = smov 0   ;;  %s2676_s0 = inlined_call_operand.vmem [shape: f32[512,32], index: 0, kind: input, shape index: {}]   ;;  %s2677_s1 = inlined_call_operand.vmem [shape: bf16[32,256], index: 1, kind: input, shape index: {}]   ;;  %s2678_s2 = inlined_call_operand.vmem [shape: f32[1,256], index: 2, kind: input, shape index: {}]   ;;  %s2679_s3 = inlined_call_operand.vmem [shape: bf16[256,128], index: 3, kind: input, shape index: {}]   ;;  %s2680_s4 = inlined_call_operand.vmem [shape: f32[1,128], index: 4, kind: input, shape index: {}]   ;;  %s2681_s5 = inlined_call_operand.vmem [shape: bf16[128,8], index: 5, kind: input, shape index: {}]   ;;  %s2682_s6 = inlined_call_operand.vmem [shape: f32[1,8], index: 6, kind: input, shape index: {}]   ;;  %s2683_s7 = inlined_call_operand.vmem [shape: f32[512,8], index: 7, kind: output, shape index: {}]  }
   0x1 LB: > { %s1713_s25 = sadd.s32 4294967295, %s2141_s24   ;;  %p1717_p0 = scmp.ge.s32.totalorder %s2141_s24, 1  ;;  %s2141_s24 = sphi %s2184_s24, %s17_s24  }
   0x2   : > { %p238_p1 = scmp.lt.s32.totalorder %s2141_s24, 3 }
   0x4   : > { %p239_p2 = pnand %p1717_p0, %p238_p1 }
   0x5   : > { %s1718_s28 = sshll.u32 (!%p239_p2), %s1713_s25, 5 }
   0x6   : > { %242 = sbr.rel (%p239_p2) target bundleno = 962 (0x3c2), region = 48  ;;  %p271_p3 = scmp.lt.s32.totalorder (!%p239_p2), %s1718_s28, 63 }
   0xb   : > { %v2195_v0 = vld [vmem:[%s2677_s1 + $0x14] ss:$8 sps:$4 sm:$0xff]   ;;  %v2200_v1 = vld [vmem:[%s2677_s1 + $0x10] ss:$8 sps:$4 sm:$0xff]   ;;  %v2143_v2 = vmov 0   ;;  %s2685_s28 = smov (!%p271_p3, %s1718_s28), 63  ;;  %v313_v45 = vlaneseq }
   0xc   : > { %400 = vmatprep.mubr.bf16.mxu0 %v2143_v2  ;;  %380 = vmatprep.subr.bf16.mxu0 %v2195_v0  ;;  %v2207_v3 = vld [vmem:[%s2677_s1 + $0x4] ss:$8 sps:$4 sm:$0xff]   ;;  %v2212_v4 = vld [vmem:[%s2677_s1] ss:$8 sps:$4 sm:$0xff]   ;;  %v2087_v5 = vld [vmem:[%s2679_s3 + $0x78] sm:$0xff]   ;;  %s1719_s16 = sshll.u32 %s2685_s28, 3 }
   0xd   : > { %381 = vmatpush1.bf16.msra.mxu0 %v2200_v1  ;;  %v2088_v6 = vld [vmem:[%s2679_s3 + $0x38] sm:$0xff]   ;;  %1832 = vmatprep.subr.bf16.mxu1 %v2087_v5  ;;  %v2089_v7 = vld [vmem:[%s2679_s3 + $0x70] sm:$0xff]   ;;  %s2233_s21 = scalar_lea.vmem %s2676_s0, %s1719_s16  ;;  %vm343_vm0 = vcmask 261120   ;;  %v2091_v14 = vld [vmem:[%s2679_s3 + $0x68] sm:$0xff]   ;;  %v2307_v46 = vshrl.u32 %v313_v45, 7  ;;  %s2559_s25 = scalar_lea.vmem %s2683_s7, %s1719_s16  ;;  %vm953_vm1 = vcmask 64512  }
   0xe   : > { %382 = vmatprep.subr.bf16.mxu0 %v2207_v3  ;;  %1833 = vmatpush3.bf16.msra.mxu1 %v2088_v6  ;;  %v2090_v8 = vld [vmem:[%s2679_s3 + $0x30] sm:$0xff]   ;;  %v283_v9 = vld [vmem:[%s2233_s21] sm:$0xff]  ;;  %v284_v10 = vld [vmem:[%s2233_s21 + $0x8] sm:$0xff] }
   0xf   : > { %1834 = vmatprep.subr.bf16.mxu1 %v2089_v7  ;;  %v299_v11 = vpack.c.bf16 %v284_v10, %v283_v9  ;;  %v285_v12 = vld [vmem:[%s2233_s21 + $0x10] sm:$0xff]  ;;  %v286_v13 = vld [vmem:[%s2233_s21 + $0x18] sm:$0xff]  ;;  %v2092_v15 = vld [vmem:[%s2679_s3 + $0x28] sm:$0xff]   ;;  %v319_v47 = vsub.s32 1, %v2307_v46  ;;  %v315_v48 = vsub.s32 0, %v2307_v46 }
  0x10   : > { %v300_v16 = vpack.c.bf16 %v286_v13, %v285_v12  ;;  %v2093_v17 = vld [vmem:[%s2679_s3 + $0x60] sm:$0xff]   ;;  %v2095_v19 = vld [vmem:[%s2679_s3 + $0x58] sm:$0xff]   ;;  %v288_v21 = vld [vmem:[%s2233_s21 + $0x28] sm:$0xff] }
  0x11   : > { %383 = vmatpush1.bf16.msra.mxu0 %v2212_v4  ;;  %v2094_v18 = vld [vmem:[%s2679_s3 + $0x20] sm:$0xff]   ;;  %v2096_v22 = vld [vmem:[%s2679_s3 + $0x18] sm:$0xff]   ;;  %v289_v24 = vld [vmem:[%s2233_s21 + $0x30] sm:$0xff] }
  0x12   : > { %1835 = vmatpush3.bf16.msra.mxu1 %v2090_v8  ;;  %v287_v20 = vld [vmem:[%s2233_s21 + $0x20] sm:$0xff]  ;;  %v290_v25 = vld [vmem:[%s2233_s21 + $0x38] sm:$0xff]  ;;  %v292_v28 = vld [vmem:[%s2233_s21 + $0x48] sm:$0xff] }
  0x13   : > { %1836 = vmatprep.subr.bf16.mxu1 %v2091_v14  ;;  %v301_v23 = vpack.c.bf16 %v288_v21, %v287_v20  ;;  %v302_v26 = vpack.c.bf16 %v290_v25, %v289_v24  ;;  %v291_v27 = vld [vmem:[%s2233_s21 + $0x40] sm:$0xff]  ;;  %v293_v30 = vld [vmem:[%s2233_s21 + $0x50] sm:$0xff]  ;;  %v294_v31 = vld [vmem:[%s2233_s21 + $0x58] sm:$0xff] }
  0x14   : > { %1726 = vmatmul.mubr.msk.bf16.vlgmr.msra.gmra.mxu0 %vm343_vm0, %v299_v11  ;;  %v303_v29 = vpack.c.bf16 %v292_v28, %v291_v27  ;;  %v304_v32 = vpack.c.bf16 %v294_v31, %v293_v30  ;;  %v295_v33 = vld [vmem:[%s2233_s21 + $0x60] sm:$0xff]  ;;  %v296_v34 = vld [vmem:[%s2233_s21 + $0x68] sm:$0xff]  ;;  %v297_v36 = vld [vmem:[%s2233_s21 + $0x70] sm:$0xff] }
  0x15   : > { %410 = vmatprep.mubr.bf16.mxu0 %v2143_v2  ;;  %v305_v35 = vpack.c.bf16 %v296_v34, %v295_v33  ;;  %v298_v37 = vld [vmem:[%s2233_s21 + $0x78] sm:$0xff]  ;;  %v2097_v39 = vld [vmem:[%s2679_s3 + $0x50] sm:$0xff]   ;;  %v2099_v41 = vld [vmem:[%s2679_s3 + $0x48] sm:$0xff]  }
  0x16   : > { %1837 = vmatpush3.bf16.msra.mxu1 %v2092_v15  ;;  %v306_v38 = vpack.c.bf16 %v298_v37, %v297_v36  ;;  %v2098_v40 = vld [vmem:[%s2679_s3 + $0x10] sm:$0xff]   ;;  %v2100_v42 = vld [vmem:[%s2679_s3 + $0x8] sm:$0xff]   ;;  %v2101_v43 = vld [vmem:[%s2679_s3 + $0x40] sm:$0xff]  }
  0x17   : > { %1838 = vmatprep.subr.bf16.mxu1 %v2093_v17  ;;  %v2102_v44 = vld [vmem:[%s2679_s3] sm:$0xff]   ;;  %v2103_v59 = vld [vmem:[%s2681_s5 + $0x38] sm:$0xff]   ;;  %v2104_v60 = vld [vmem:[%s2681_s5 + $0x30] sm:$0xff]  }
  0x18   : > { %v311_v49 = vld [vmem:[%s2678_s2] sm:$0x3]  ;;  %1992 = vmatprep.subr.bf16.mxu0 %v2103_v59  ;;  %v2105_v8 = vld [vmem:[%s2681_s5 + $0x28] sm:$0xff]  }
  0x19   : > { %v2316_v51 = vrot.slane %v311_v49, %v319_v47  ;;  %v2320_v52 = vrot.slane %v311_v49, %v315_v48  ;;  %1993 = vmatpush3.bf16.msra.mxu0 %v2103_v59 }
  0x1a   : > { %1839 = vmatpush3.bf16.msra.mxu1 %v2094_v18  ;;  %1994 = vmatprep.subr.bf16.mxu0 %v2104_v60 }
  0x1b   : > { %1840 = vmatprep.subr.bf16.mxu1 %v2095_v19 }
  0x1c   : > { %1727 = vmatmul.mubr.msk.bf16.gmra.mxu0 %vm343_vm0, %v300_v16 }
  0x1d   : > { %420 = vmatprep.mubr.bf16.mxu0 %v2143_v2  ;;  %1995 = vmatpush3.bf16.msra.mxu0 %v2104_v60 }
  0x1e   : > { %1841 = vmatpush3.bf16.msra.mxu1 %v2096_v22  ;;  %1996 = vmatprep.subr.bf16.mxu0 %v2105_v8 }
  0x1f   : > { %1842 = vmatprep.subr.bf16.mxu1 %v2097_v39 }
  0x21   : > { %1997 = vmatpush3.bf16.msra.mxu0 %v2105_v8 }
  0x22   : > { %1843 = vmatpush3.bf16.msra.mxu1 %v2098_v40 }
  0x23   : > { %1844 = vmatprep.subr.bf16.mxu1 %v2099_v41 }
  0x24   : > { %1728 = vmatmul.mubr.msk.bf16.gmra.mxu0 %vm343_vm0, %v301_v23 }
  0x25   : > { %430 = vmatprep.mubr.bf16.mxu0 %v2143_v2 }
  0x26   : > { %1845 = vmatpush3.bf16.msra.mxu1 %v2100_v42 }
  0x27   : > { %1846 = vmatprep.subr.bf16.mxu1 %v2101_v43 }
  0x2a   : > { %1847 = vmatpush3.bf16.msra.mxu1 %v2102_v44 }
  0x2b   : > { %1067 = vmatprep.subr.bf16.mxu1 %v2195_v0 }
  0x2c   : > { %1729 = vmatmul.mubr.msk.bf16.gmra.mxu0 %vm343_vm0, %v302_v26 }
  0x2d   : > { %440 = vmatprep.mubr.bf16.mxu0 %v2143_v2 }
  0x34   : > { %1730 = vmatmul.mubr.msk.bf16.gmra.mxu0 %vm343_vm0, %v303_v29 }
  0x35   : > { %450 = vmatprep.mubr.bf16.mxu0 %v2143_v2 }
  0x3c   : > { %1731 = vmatmul.mubr.msk.bf16.gmra.mxu0 %vm343_vm0, %v304_v32 }
  0x3d   : > { %460 = vmatprep.mubr.bf16.mxu0 %v2143_v2 }
  0x44   : > { %1732 = vmatmul.mubr.msk.bf16.gmra.mxu0 %vm343_vm0, %v305_v35 }
  0x45   : > { %470 = vmatprep.mubr.bf16.mxu0 %v2143_v2 }
  0x4c   : > { %1733 = vmatmul.mubr.msk.bf16.gmra.mxu0 %vm343_vm0, %v306_v38 }
  0xd4   : > { %v402_v50 = vpop.f32.mrf.mxu0 }
  0xd5   : > { %v403_v57 = vadd.f32 %v402_v50, %v2320_v52 }
  0xd6   : > { %v404_v53 = vpop.f32.mrf.mxu0 }
  0xd7   : > { %v405_v55 = vadd.f32 %v404_v53, %v2316_v51  ;;  %v481_v6 = vmax.f32 %v403_v57, 0.0 }
  0xd8   : > { %v406_v54 = vpop.f32.mrf.mxu0 }
  0xd9   : > { %v407_v56 = vadd.f32 %v406_v54, %v2320_v52  ;;  %v482_v0 = vmax.f32 %v405_v55, 0.0 }
  0xda   : > { %v408_v58 = vpop.f32.mrf.mxu0 }
  0xdb   : > { %v409_v61 = vadd.f32 %v408_v58, %v2316_v51  ;;  %v483_v62 = vmax.f32 %v407_v56, 0.0 }
  0xdc   : > { %v412_v63 = vpop.f32.mrf.mxu0 }
  0xdd   : > { %v484_v5 = vmax.f32 %v409_v61, 0.0  ;;  %v513_v10 = vpack.c.bf16 %v483_v62, %v481_v6  ;;  %v413_v14 = vadd.f32 %v412_v63, %v2320_v52 }
  0xde   : > { %v414_v7 = vpop.f32.mrf.mxu0 }
  0xdf   : > { %v514_v9 = vpack.c.bf16 %v484_v5, %v482_v0  ;;  %v415_v12 = vadd.f32 %v414_v7, %v2316_v51  ;;  %v485_v21 = vmax.f32 %v413_v14, 0.0 }
  0xe0   : > { %v416_v11 = vpop.f32.mrf.mxu0 }
  0xe1   : > { %v417_v13 = vadd.f32 %v416_v11, %v2320_v52  ;;  %696 = vmatprep.mubr.bf16.mxu1 %v514_v9  ;;  %v486_v19 = vmax.f32 %v415_v12, 0.0 }
  0xe2   : > { %v418_v15 = vpop.f32.mrf.mxu0  ;;  %697 = vmatmul.mubr.bf16.vlgmr.msra.gmra.mxu1 %v513_v10 }
  0xe3   : > { %v419_v16 = vadd.f32 %v418_v15, %v2316_v51  ;;  %1068 = vmatpush1.bf16.msra.mxu1 %v2200_v1  ;;  %v487_v17 = vmax.f32 %v417_v13, 0.0 }
  0xe4   : > { %v422_v18 = vpop.f32.mrf.mxu0  ;;  %1069 = vmatprep.subr.bf16.mxu1 %v2207_v3 }
  0xe5   : > { %v488_v20 = vmax.f32 %v419_v16, 0.0  ;;  %v515_v24 = vpack.c.bf16 %v487_v17, %v485_v21  ;;  %v423_v1 = vadd.f32 %v422_v18, %v2320_v52 }
  0xe6   : > { %v424_v22 = vpop.f32.mrf.mxu0 }
  0xe7   : > { %v516_v23 = vpack.c.bf16 %v488_v20, %v486_v19  ;;  %1070 = vmatpush1.bf16.msra.mxu1 %v2212_v4  ;;  %v425_v26 = vadd.f32 %v424_v22, %v2316_v51  ;;  %v489_v33 = vmax.f32 %v423_v1, 0.0 }
  0xe8   : > { %v426_v25 = vpop.f32.mrf.mxu0 }
  0xe9   : > { %v427_v27 = vadd.f32 %v426_v25, %v2320_v52  ;;  %704 = vmatprep.mubr.bf16.mxu1 %v516_v23  ;;  %v490_v31 = vmax.f32 %v425_v26, 0.0 }
  0xea   : > { %v428_v28 = vpop.f32.mrf.mxu0  ;;  %705 = vmatmul.mubr.bf16.gmra.mxu1 %v515_v24 }
  0xeb   : > { %v429_v3 = vadd.f32 %v428_v28, %v2316_v51  ;;  %v491_v29 = vmax.f32 %v427_v27, 0.0 }
  0xec   : > { %v432_v30 = vpop.f32.mrf.mxu0 }
  0xed   : > { %v492_v32 = vmax.f32 %v429_v3, 0.0  ;;  %v517_v35 = vpack.c.bf16 %v491_v29, %v489_v33  ;;  %v433_v39 = vadd.f32 %v432_v30, %v2320_v52 }
  0xee   : > { %v434_v34 = vpop.f32.mrf.mxu0 }
  0xef   : > { %v518_v4 = vpack.c.bf16 %v492_v32, %v490_v31  ;;  %v435_v37 = vadd.f32 %v434_v34, %v2316_v51  ;;  %v493_v49 = vmax.f32 %v433_v39, 0.0 }
  0xf0   : > { %v436_v36 = vpop.f32.mrf.mxu0 }
  0xf1   : > { %v437_v38 = vadd.f32 %v436_v36, %v2320_v52  ;;  %712 = vmatprep.mubr.bf16.mxu1 %v518_v4  ;;  %v494_v44 = vmax.f32 %v435_v37, 0.0 }
  0xf2   : > { %v438_v40 = vpop.f32.mrf.mxu0  ;;  %713 = vmatmul.mubr.bf16.gmra.mxu1 %v517_v35 }
  0xf3   : > { %v439_v41 = vadd.f32 %v438_v40, %v2316_v51  ;;  %v495_v42 = vmax.f32 %v437_v38, 0.0 }
  0xf4   : > { %v442_v43 = vpop.f32.mrf.mxu0 }
  0xf5   : > { %v496_v45 = vmax.f32 %v439_v41, 0.0  ;;  %v519_v54 = vpack.c.bf16 %v495_v42, %v493_v49  ;;  %v443_v58 = vadd.f32 %v442_v43, %v2320_v52  ;;  %v1760_v49 = vld [vmem:[%s2233_s21 + $0x80] sm:$0xff] }
  0xf6   : > { %v444_v50 = vpop.f32.mrf.mxu0 }
  0xf7   : > { %v520_v53 = vpack.c.bf16 %v496_v45, %v494_v44  ;;  %v445_v56 = vadd.f32 %v444_v50, %v2316_v51  ;;  %v497_v5 = vmax.f32 %v443_v58, 0.0  ;;  %v1761_v50 = vld [vmem:[%s2233_s21 + $0x88] sm:$0xff] }
  0xf8   : > { %v446_v55 = vpop.f32.mrf.mxu0  ;;  %v1765_v58 = vld [vmem:[%s2233_s21 + $0xa8] sm:$0xff] }
  0xf9   : > { %v447_v57 = vadd.f32 %v446_v55, %v2320_v52  ;;  %720 = vmatprep.mubr.bf16.mxu1 %v520_v53  ;;  %v498_v63 = vmax.f32 %v445_v56, 0.0  ;;  %v1763_v53 = vld [vmem:[%s2233_s21 + $0x98] sm:$0xff] }
  0xfa   : > { %v448_v59 = vpop.f32.mrf.mxu0  ;;  %721 = vmatmul.mubr.bf16.gmra.mxu1 %v519_v54  ;;  %v2106_v54 = vld [vmem:[%s2681_s5 + $0x20] sm:$0xff]   ;;  %v2107_v56 = vld [vmem:[%s2681_s5 + $0x18] sm:$0xff]  }
  0xfb   : > { %v449_v60 = vadd.f32 %v448_v59, %v2316_v51  ;;  %v499_v61 = vmax.f32 %v447_v57, 0.0  ;;  %1998 = vmatprep.subr.bf16.mxu0 %v2106_v54  ;;  %v1764_v57 = vld [vmem:[%s2233_s21 + $0xa0] sm:$0xff]  ;;  %v2108_v59 = vld [vmem:[%s2681_s5 + $0x10] sm:$0xff]  }
  0xfc   : > { %v452_v62 = vpop.f32.mrf.mxu0  ;;  %1999 = vmatpush3.bf16.msra.mxu0 %v2106_v54 }
  0xfd   : > { %v500_v0 = vmax.f32 %v449_v60, 0.0  ;;  %v521_v8 = vpack.c.bf16 %v499_v61, %v497_v5  ;;  %v453_v12 = vadd.f32 %v452_v62, %v2320_v52  ;;  %2000 = vmatprep.subr.bf16.mxu0 %v2107_v56  ;;  %v989_v60 = vpack.c.bf16 %v1765_v58, %v1764_v57  ;;  %v2109_v61 = vld [vmem:[%s2681_s5 + $0x8] sm:$0xff]   ;;  %v1766_v62 = vld [vmem:[%s2233_s21 + $0xb0] sm:$0xff] }
  0xfe   : > { %v454_v6 = vpop.f32.mrf.mxu0 }
  0xff   : > { %v522_v7 = vpack.c.bf16 %v500_v0, %v498_v63  ;;  %v455_v10 = vadd.f32 %v454_v6, %v2316_v51  ;;  %v501_v19 = vmax.f32 %v453_v12, 0.0  ;;  %v1767_v63 = vld [vmem:[%s2233_s21 + $0xb8] sm:$0xff]  ;;  %v2110_v0 = vld [vmem:[%s2681_s5] sm:$0xff]  }
 0x100   : > { %v456_v9 = vpop.f32.mrf.mxu0  ;;  %2001 = vmatpush3.bf16.msra.mxu0 %v2107_v56  ;;  %v990_v5 = vpack.c.bf16 %v1767_v63, %v1766_v62  ;;  %v1768_v6 = vld [vmem:[%s2233_s21 + $0xc0] sm:$0xff] }
 0x101   : > { %v457_v11 = vadd.f32 %v456_v9, %v2320_v52  ;;  %728 = vmatprep.mubr.bf16.mxu1 %v522_v7  ;;  %v502_v17 = vmax.f32 %v455_v10, 0.0  ;;  %2002 = vmatprep.subr.bf16.mxu0 %v2108_v59  ;;  %v1769_v7 = vld [vmem:[%s2233_s21 + $0xc8] sm:$0xff]  ;;  %v1770_v9 = vld [vmem:[%s2233_s21 + $0xd0] sm:$0xff]  ;;  %v1771_v10 = vld [vmem:[%s2233_s21 + $0xd8] sm:$0xff] }
 0x102   : > { %v458_v13 = vpop.f32.mrf.mxu0  ;;  %729 = vmatmul.mubr.bf16.gmra.mxu1 %v521_v8  ;;  %v991_v8 = vpack.c.bf16 %v1769_v7, %v1768_v6  ;;  %v1772_v12 = vld [vmem:[%s2233_s21 + $0xe0] sm:$0xff] }
 0x103   : > { %v459_v14 = vadd.f32 %v458_v13, %v2316_v51  ;;  %v503_v15 = vmax.f32 %v457_v11, 0.0  ;;  %v992_v11 = vpack.c.bf16 %v1771_v10, %v1770_v9  ;;  %v1773_v13 = vld [vmem:[%s2233_s21 + $0xe8] sm:$0xff]  ;;  %v2118_v6 = vld [vmem:[%s2679_s3 + $0x20] sm:$0xff]  }
 0x104   : > { %v462_v16 = vpop.f32.mrf.mxu0  ;;  %2003 = vmatpush3.bf16.msra.mxu0 %v2108_v59  ;;  %v2116_v59 = vld [vmem:[%s2679_s3 + $0x28] sm:$0xff]  }
 0x105   : > { %v504_v18 = vmax.f32 %v459_v14, 0.0  ;;  %v523_v22 = vpack.c.bf16 %v503_v15, %v501_v19  ;;  %v463_v26 = vadd.f32 %v462_v16, %v2320_v52  ;;  %2004 = vmatprep.subr.bf16.mxu0 %v2109_v61  ;;  %v993_v14 = vpack.c.bf16 %v1773_v13, %v1772_v12  ;;  %v2111_v15 = vld [vmem:[%s2679_s3 + $0x78] sm:$0xff]   ;;  %v1774_v16 = vld [vmem:[%s2233_s21 + $0xf0] sm:$0xff] }
 0x106   : > { %v464_v20 = vpop.f32.mrf.mxu0 }
 0x107   : > { %v524_v21 = vpack.c.bf16 %v504_v18, %v502_v17  ;;  %v465_v24 = vadd.f32 %v464_v20, %v2316_v51  ;;  %v505_v31 = vmax.f32 %v463_v26, 0.0  ;;  %v1775_v17 = vld [vmem:[%s2233_s21 + $0xf8] sm:$0xff] }
 0x108   : > { %v466_v23 = vpop.f32.mrf.mxu0  ;;  %2005 = vmatpush3.bf16.msra.mxu0 %v2109_v61  ;;  %v994_v18 = vpack.c.bf16 %v1775_v17, %v1774_v16  ;;  %v2117_v61 = vld [vmem:[%s2679_s3 + $0x60] sm:$0xff]   ;;  %v2121_v16 = vld [vmem:[%s2679_s3 + $0x50] sm:$0xff]  }
 0x109   : > { %v467_v25 = vadd.f32 %v466_v23, %v2320_v52  ;;  %736 = vmatprep.mubr.bf16.mxu1 %v524_v21  ;;  %v506_v29 = vmax.f32 %v465_v24, 0.0  ;;  %2006 = vmatprep.subr.bf16.mxu0 %v2110_v0 }
 0x10a   : > { %v468_v27 = vpop.f32.mrf.mxu0  ;;  %737 = vmatmul.mubr.bf16.gmra.mxu1 %v523_v22  ;;  %v2419_v22 = vld [vmem:[%s2680_s4] ss:$0 sm:$0xff] }
 0x10b   : > { %v469_v1 = vadd.f32 %v468_v27, %v2316_v51  ;;  %v507_v28 = vmax.f32 %v467_v25, 0.0 }
 0x10c   : > { %v472_v3 = vpop.f32.mrf.mxu0  ;;  %2007 = vmatpush3.bf16.msra.mxu0 %v2110_v0 }
 0x10d   : > { %v508_v30 = vmax.f32 %v469_v1, 0.0  ;;  %v525_v34 = vpack.c.bf16 %v507_v28, %v505_v31  ;;  %v473_v37 = vadd.f32 %v472_v3, %v2320_v52  ;;  %1912 = vmatprep.subr.bf16.mxu0 %v2111_v15 }
 0x10e   : > { %v474_v32 = vpop.f32.mrf.mxu0 }
 0x10f   : > { %v526_v33 = vpack.c.bf16 %v508_v30, %v506_v29  ;;  %v475_v35 = vadd.f32 %v474_v32, %v2316_v51  ;;  %v509_v43 = vmax.f32 %v473_v37, 0.0 }
 0x110   : > { %v476_v4 = vpop.f32.mrf.mxu0 }
 0x111   : > { %v477_v36 = vadd.f32 %v476_v4, %v2320_v52  ;;  %744 = vmatprep.mubr.bf16.mxu1 %v526_v33  ;;  %v510_v41 = vmax.f32 %v475_v35, 0.0  ;;  %v987_v52 = vpack.c.bf16 %v1761_v50, %v1760_v49 }
 0x112   : > { %v478_v38 = vpop.f32.mrf.mxu0  ;;  %745 = vmatmul.mubr.bf16.gmra.mxu1 %v525_v34 }
 0x113   : > { %v479_v39 = vadd.f32 %v478_v38, %v2316_v51  ;;  %v511_v40 = vmax.f32 %v477_v36, 0.0  ;;  %v1762_v51 = vld [vmem:[%s2233_s21 + $0x90] sm:$0xff] }
 0x114   : > { %v988_v55 = vpack.c.bf16 %v1763_v53, %v1762_v51  ;;  %v2115_v53 = vld [vmem:[%s2679_s3 + $0x68] sm:$0xff]  }
 0x115   : > { %v512_v42 = vmax.f32 %v479_v39, 0.0  ;;  %v527_v45 = vpack.c.bf16 %v511_v40, %v509_v43  ;;  %v2113_v43 = vld [vmem:[%s2679_s3 + $0x70] sm:$0xff]  }
 0x117   : > { %v528_v44 = vpack.c.bf16 %v512_v42, %v510_v41  ;;  %v2112_v41 = vld [vmem:[%s2679_s3 + $0x38] sm:$0xff]  }
 0x119   : > { %752 = vmatprep.mubr.bf16.mxu1 %v528_v44 }
 0x11a   : > { %753 = vmatmul.mubr.bf16.gmra.mxu1 %v527_v45 }
 0x11b   : > { %1087 = vmatprep.mubr.bf16.mxu1 %v2143_v2 }
 0x122   : > { %1780 = vmatmul.mubr.msk.bf16.vlgmr.msra.gmra.mxu1 %vm343_vm0, %v987_v52  ;;  %v2114_v52 = vld [vmem:[%s2679_s3 + $0x30] sm:$0xff]  }
 0x123   : > { %1097 = vmatprep.mubr.bf16.mxu1 %v2143_v2 }
 0x12a   : > { %1781 = vmatmul.mubr.msk.bf16.gmra.mxu1 %vm343_vm0, %v988_v55 }
 0x12b   : > { %1107 = vmatprep.mubr.bf16.mxu1 %v2143_v2 }
 0x132   : > { %1782 = vmatmul.mubr.msk.bf16.gmra.mxu1 %vm343_vm0, %v989_v60 }
 0x133   : > { %1117 = vmatprep.mubr.bf16.mxu1 %v2143_v2 }
 0x13a   : > { %1783 = vmatmul.mubr.msk.bf16.gmra.mxu1 %vm343_vm0, %v990_v5 }
 0x13b   : > { %1127 = vmatprep.mubr.bf16.mxu1 %v2143_v2 }
 0x142   : > { %1784 = vmatmul.mubr.msk.bf16.gmra.mxu1 %vm343_vm0, %v991_v8  ;;  %v2119_v8 = vld [vmem:[%s2679_s3 + $0x58] sm:$0xff]  }
 0x143   : > { %1137 = vmatprep.mubr.bf16.mxu1 %v2143_v2 }
 0x14a   : > { %1785 = vmatmul.mubr.msk.bf16.gmra.mxu1 %vm343_vm0, %v992_v11 }
 0x14b   : > { %1147 = vmatprep.mubr.bf16.mxu1 %v2143_v2 }
 0x152   : > { %1786 = vmatmul.mubr.msk.bf16.gmra.mxu1 %vm343_vm0, %v993_v14  ;;  %v2120_v14 = vld [vmem:[%s2679_s3 + $0x18] sm:$0xff]  }
 0x153   : > { %1157 = vmatprep.mubr.bf16.mxu1 %v2143_v2 }
 0x15a   : > { %1787 = vmatmul.mubr.msk.bf16.gmra.mxu1 %vm343_vm0, %v994_v18 }
 0x1a2   : > { %v1848_v19 = vpop.f32.mrf.mxu1 }
 0x1a4   : > { %v1849_v20 = vpop.f32.mrf.mxu1 }
 0x1a5   : > { %v1850_v21 = vadd.f32 %v1849_v20, %v1848_v19 }
 0x1a6   : > { %v1851_v23 = vpop.f32.mrf.mxu1 }
 0x1a7   : > { %v699_v25 = vadd.f32 %v1850_v21, %v2419_v22  ;;  %v2122_v21 = vld [vmem:[%s2679_s3 + $0x10] sm:$0xff]  }
 0x1a8   : > { %v1852_v24 = vpop.f32.mrf.mxu1 }
 0x1a9   : > { %v1853_v26 = vadd.f32 %v1852_v24, %v1851_v23  ;;  %v761_v28 = vmax.f32 %v699_v25, 0.0  ;;  %v2123_v24 = vld [vmem:[%s2679_s3 + $0x48] sm:$0xff]  }
 0x1aa   : > { %v1854_v27 = vpop.f32.mrf.mxu1 }
 0x1ab   : > { %v702_v2 = vadd.f32 %v1853_v26, %v2419_v22 }
 0x1ac   : > { %v1855_v1 = vpop.f32.mrf.mxu1 }
 0x1ad   : > { %v762_v3 = vmax.f32 %v702_v2, 0.0  ;;  %v1856_v29 = vadd.f32 %v1855_v1, %v1854_v27 }
 0x1ae   : > { %v1857_v30 = vpop.f32.mrf.mxu1 }
 0x1af   : > { %v777_v31 = vpack.c.bf16 %v762_v3, %v761_v28  ;;  %v707_v33 = vadd.f32 %v1856_v29, %v2419_v22  ;;  %v2124_v28 = vld [vmem:[%s2679_s3 + $0x8] sm:$0xff]   ;;  %v2125_v29 = vld [vmem:[%s2679_s3 + $0x40] sm:$0xff]  }
 0x1b0   : > { %v1858_v32 = vpop.f32.mrf.mxu1 }
 0x1b1   : > { %v1859_v34 = vadd.f32 %v1858_v32, %v1857_v30  ;;  %2008 = vmatprep.mubr.bf16.mxu0 %v777_v31  ;;  %v763_v37 = vmax.f32 %v707_v33, 0.0 }
 0x1b2   : > { %v1860_v4 = vpop.f32.mrf.mxu1 }
 0x1b3   : > { %v710_v35 = vadd.f32 %v1859_v34, %v2419_v22  ;;  %v2126_v34 = vld [vmem:[%s2679_s3] sm:$0xff]  }
 0x1b4   : > { %v1861_v36 = vpop.f32.mrf.mxu1 }
 0x1b5   : > { %v764_v38 = vmax.f32 %v710_v35, 0.0  ;;  %v1862_v39 = vadd.f32 %v1861_v36, %v1860_v4 }
 0x1b6   : > { %v1863_v40 = vpop.f32.mrf.mxu1 }
 0x1b7   : > { %v778_v42 = vpack.c.bf16 %v764_v38, %v763_v37  ;;  %v715_v45 = vadd.f32 %v1862_v39, %v2419_v22 }
 0x1b8   : > { %v1864_v44 = vpop.f32.mrf.mxu1 }
 0x1b9   : > { %v1865_v49 = vadd.f32 %v1864_v44, %v1863_v40  ;;  %2009 = vmatmul.mubr.bf16.vlgmr.msra.gmra.mxu0 %v778_v42  ;;  %v765_v55 = vmax.f32 %v715_v45, 0.0 }
 0x1ba   : > { %v1866_v50 = vpop.f32.mrf.mxu1  ;;  %1913 = vmatpush3.bf16.msra.mxu0 %v2112_v41 }
 0x1bb   : > { %v718_v51 = vadd.f32 %v1865_v49, %v2419_v22  ;;  %1914 = vmatprep.subr.bf16.mxu0 %v2113_v43 }
 0x1bc   : > { %v1867_v54 = vpop.f32.mrf.mxu1 }
 0x1bd   : > { %v766_v56 = vmax.f32 %v718_v51, 0.0  ;;  %v1868_v57 = vadd.f32 %v1867_v54, %v1866_v50 }
 0x1be   : > { %v1869_v58 = vpop.f32.mrf.mxu1  ;;  %1915 = vmatpush3.bf16.msra.mxu0 %v2114_v52 }
 0x1bf   : > { %v779_v60 = vpack.c.bf16 %v766_v56, %v765_v55  ;;  %1916 = vmatprep.subr.bf16.mxu0 %v2115_v53  ;;  %v723_v63 = vadd.f32 %v1868_v57, %v2419_v22  ;;  %v999_v56 = vld [vmem:[%s2678_s2] sm:$0x3] }
 0x1c0   : > { %v1870_v62 = vpop.f32.mrf.mxu1 }
 0x1c1   : > { %v1871_v0 = vadd.f32 %v1870_v62, %v1869_v58  ;;  %2012 = vmatprep.mubr.bf16.mxu0 %v779_v60  ;;  %v767_v10 = vmax.f32 %v723_v63, 0.0 }
 0x1c2   : > { %v1872_v5 = vpop.f32.mrf.mxu1  ;;  %1917 = vmatpush3.bf16.msra.mxu0 %v2116_v59 }
 0x1c3   : > { %v726_v7 = vadd.f32 %v1871_v0, %v2419_v22  ;;  %1918 = vmatprep.subr.bf16.mxu0 %v2117_v61  ;;  %v2487_v61 = vrot.slane %v999_v56, %v319_v47 }
 0x1c4   : > { %v1873_v9 = vpop.f32.mrf.mxu1 }
 0x1c5   : > { %v768_v11 = vmax.f32 %v726_v7, 0.0  ;;  %v1874_v12 = vadd.f32 %v1873_v9, %v1872_v5  ;;  %v2491_v5 = vrot.slane %v999_v56, %v315_v48 }
 0x1c6   : > { %v1875_v13 = vpop.f32.mrf.mxu1  ;;  %1919 = vmatpush3.bf16.msra.mxu0 %v2118_v6 }
 0x1c7   : > { %v780_v15 = vpack.c.bf16 %v768_v11, %v767_v10  ;;  %1920 = vmatprep.subr.bf16.mxu0 %v2119_v8  ;;  %v731_v18 = vadd.f32 %v1874_v12, %v2419_v22 }
 0x1c8   : > { %v1876_v17 = vpop.f32.mrf.mxu1 }
 0x1c9   : > { %v1877_v19 = vadd.f32 %v1876_v17, %v1875_v13  ;;  %2013 = vmatmul.mubr.bf16.gmra.mxu0 %v780_v15  ;;  %v769_v26 = vmax.f32 %v731_v18, 0.0 }
 0x1ca   : > { %v1878_v20 = vpop.f32.mrf.mxu1  ;;  %1921 = vmatpush3.bf16.msra.mxu0 %v2120_v14 }
 0x1cb   : > { %v734_v23 = vadd.f32 %v1877_v19, %v2419_v22  ;;  %1922 = vmatprep.subr.bf16.mxu0 %v2121_v16 }
 0x1cc   : > { %v1879_v25 = vpop.f32.mrf.mxu1 }
 0x1cd   : > { %v770_v27 = vmax.f32 %v734_v23, 0.0  ;;  %v1880_v2 = vadd.f32 %v1879_v25, %v1878_v20 }
 0x1ce   : > { %v1881_v1 = vpop.f32.mrf.mxu1  ;;  %1923 = vmatpush3.bf16.msra.mxu0 %v2122_v21 }
 0x1cf   : > { %v781_v3 = vpack.c.bf16 %v770_v27, %v769_v26  ;;  %1924 = vmatprep.subr.bf16.mxu0 %v2123_v24  ;;  %v739_v31 = vadd.f32 %v1880_v2, %v2419_v22 }
 0x1d0   : > { %v1882_v30 = vpop.f32.mrf.mxu1 }
 0x1d1   : > { %v1883_v32 = vadd.f32 %v1882_v30, %v1881_v1  ;;  %2016 = vmatprep.mubr.bf16.mxu0 %v781_v3  ;;  %v771_v36 = vmax.f32 %v739_v31, 0.0 }
 0x1d2   : > { %v1884_v33 = vpop.f32.mrf.mxu1  ;;  %1925 = vmatpush3.bf16.msra.mxu0 %v2124_v28 }
 0x1d3   : > { %v742_v4 = vadd.f32 %v1883_v32, %v2419_v22  ;;  %1926 = vmatprep.subr.bf16.mxu0 %v2125_v29 }
 0x1d4   : > { %v1885_v35 = vpop.f32.mrf.mxu1 }
 0x1d5   : > { %v772_v37 = vmax.f32 %v742_v4, 0.0  ;;  %v1886_v38 = vadd.f32 %v1885_v35, %v1884_v33 }
 0x1d6   : > { %v1887_v39 = vpop.f32.mrf.mxu1  ;;  %1927 = vmatpush3.bf16.msra.mxu0 %v2126_v34 }
 0x1d7   : > { %v782_v40 = vpack.c.bf16 %v772_v37, %v771_v36  ;;  %v747_v42 = vadd.f32 %v1886_v38, %v2419_v22 }
 0x1d8   : > { %v1888_v41 = vpop.f32.mrf.mxu1 }
 0x1d9   : > { %v1889_v43 = vadd.f32 %v1888_v41, %v1887_v39  ;;  %2017 = vmatmul.mubr.bf16.gmra.mxu0 %v782_v40  ;;  %v773_v50 = vmax.f32 %v747_v42, 0.0 }
 0x1da   : > { %v1890_v44 = vpop.f32.mrf.mxu1 }
 0x1db   : > { %v750_v45 = vadd.f32 %v1889_v43, %v2419_v22 }
 0x1dc   : > { %v1891_v49 = vpop.f32.mrf.mxu1 }
 0x1dd   : > { %v774_v52 = vmax.f32 %v750_v45, 0.0  ;;  %v1892_v51 = vadd.f32 %v1891_v49, %v1890_v44 }
 0x1de   : > { %v1893_v53 = vpop.f32.mrf.mxu1 }
 0x1df   : > { %v783_v54 = vpack.c.bf16 %v774_v52, %v773_v50  ;;  %v755_v57 = vadd.f32 %v1892_v51, %v2419_v22 }
 0x1e0   : > { %v1894_v55 = vpop.f32.mrf.mxu1 }
 0x1e1   : > { %v1895_v58 = vadd.f32 %v1894_v55, %v1893_v53  ;;  %2020 = vmatprep.mubr.bf16.mxu0 %v783_v54  ;;  %v775_v63 = vmax.f32 %v755_v57, 0.0 }
 0x1e2   : > { %v1089_v59 = vpop.f32.mrf.mxu1 }
 0x1e3   : > { %v758_v60 = vadd.f32 %v1895_v58, %v2419_v22  ;;  %v1090_v11 = vadd.f32 %v1089_v59, %v2491_v5 }
 0x1e4   : > { %v1091_v62 = vpop.f32.mrf.mxu1 }
 0x1e5   : > { %v776_v0 = vmax.f32 %v758_v60, 0.0  ;;  %v1092_v7 = vadd.f32 %v1091_v62, %v2487_v61  ;;  %v1168_v46 = vmax.f32 %v1090_v11, 0.0 }
 0x1e6   : > { %v1093_v6 = vpop.f32.mrf.mxu1 }
 0x1e7   : > { %v1094_v8 = vadd.f32 %v1093_v6, %v2491_v5  ;;  %v784_v9 = vpack.c.bf16 %v776_v0, %v775_v63  ;;  %v1169_v13 = vmax.f32 %v1092_v7, 0.0 }
 0x1e8   : > { %v1095_v10 = vpop.f32.mrf.mxu1 }
 0x1e9   : > { %v1096_v12 = vadd.f32 %v1095_v10, %v2487_v61  ;;  %2021 = vmatmul.mubr.bf16.gmra.mxu0 %v784_v9  ;;  %v1170_v14 = vmax.f32 %v1094_v8, 0.0 }
 0x1ea   : > { %v1099_v47 = vpop.f32.mrf.mxu1 }
 0x1eb   : > { %v1171_v15 = vmax.f32 %v1096_v12, 0.0  ;;  %v1200_v18 = vpack.c.bf16 %v1170_v14, %v1168_v46  ;;  %v1100_v23 = vadd.f32 %v1099_v47, %v2491_v5 }
 0x1ec   : > { %v1101_v16 = vpop.f32.mrf.mxu1 }
 0x1ed   : > { %v1201_v48 = vpack.c.bf16 %v1171_v15, %v1169_v13  ;;  %v1102_v19 = vadd.f32 %v1101_v16, %v2487_v61  ;;  %v1172_v28 = vmax.f32 %v1100_v23, 0.0 }
 0x1ee   : > { %v1103_v17 = vpop.f32.mrf.mxu1 }
 0x1ef   : > { %v1104_v20 = vadd.f32 %v1103_v17, %v2491_v5  ;;  %1383 = vmatprep.mubr.bf16.mxu0 %v1201_v48  ;;  %v1173_v26 = vmax.f32 %v1102_v19, 0.0 }
 0x1f0   : > { %v1105_v21 = vpop.f32.mrf.mxu1 }
 0x1f1   : > { %v1106_v24 = vadd.f32 %v1105_v21, %v2487_v61  ;;  %1384 = vmatmul.mubr.bf16.vlgmr.msra.gmra.mxu0 %v1200_v18  ;;  %v1174_v27 = vmax.f32 %v1104_v20, 0.0 }
 0x1f2   : > { %v1109_v25 = vpop.f32.mrf.mxu1 }
 0x1f3   : > { %v1175_v2 = vmax.f32 %v1106_v24, 0.0  ;;  %v1202_v30 = vpack.c.bf16 %v1174_v27, %v1172_v28  ;;  %v1110_v34 = vadd.f32 %v1109_v25, %v2491_v5 }
 0x1f4   : > { %v1111_v1 = vpop.f32.mrf.mxu1 }
 0x1f5   : > { %v1203_v3 = vpack.c.bf16 %v1175_v2, %v1173_v26  ;;  %v1112_v31 = vadd.f32 %v1111_v1, %v2487_v61  ;;  %v1176_v40 = vmax.f32 %v1110_v34, 0.0 }
 0x1f6   : > { %v1113_v29 = vpop.f32.mrf.mxu1 }
 0x1f7   : > { %v1114_v32 = vadd.f32 %v1113_v29, %v2491_v5  ;;  %1391 = vmatprep.mubr.bf16.mxu0 %v1203_v3  ;;  %v1177_v36 = vmax.f32 %v1112_v31, 0.0 }
 0x1f8   : > { %v1115_v33 = vpop.f32.mrf.mxu1 }
 0x1f9   : > { %v1116_v4 = vadd.f32 %v1115_v33, %v2487_v61  ;;  %1392 = vmatmul.mubr.bf16.gmra.mxu0 %v1202_v30  ;;  %v1178_v37 = vmax.f32 %v1114_v32, 0.0 }
 0x1fa   : > { %v1119_v35 = vpop.f32.mrf.mxu1 }
 0x1fb   : > { %v1179_v38 = vmax.f32 %v1116_v4, 0.0  ;;  %v1204_v43 = vpack.c.bf16 %v1178_v37, %v1176_v40  ;;  %v1120_v50 = vadd.f32 %v1119_v35, %v2491_v5 }
 0x1fc   : > { %v1121_v39 = vpop.f32.mrf.mxu1 }
 0x1fd   : > { %v1205_v41 = vpack.c.bf16 %v1179_v38, %v1177_v36  ;;  %v1122_v44 = vadd.f32 %v1121_v39, %v2487_v61  ;;  %v1180_v57 = vmax.f32 %v1120_v50, 0.0 }
 0x1fe   : > { %v1123_v42 = vpop.f32.mrf.mxu1 }
 0x1ff   : > { %v1124_v45 = vadd.f32 %v1123_v42, %v2491_v5  ;;  %1399 = vmatprep.mubr.bf16.mxu0 %v1205_v41  ;;  %v1181_v53 = vmax.f32 %v1122_v44, 0.0  ;;  %v2127_v44 = vld [vmem:[%s2681_s5 + $0x38] sm:$0xff]  }
 0x200   : > { %v1125_v49 = vpop.f32.mrf.mxu1  ;;  %2056 = vmatprep.subr.bf16.mxu1 %v2127_v44  ;;  %2024 = vmatprep.subr.bf16.mxu0 %v2127_v44 }
 0x201   : > { %v1126_v52 = vadd.f32 %v1125_v49, %v2487_v61  ;;  %1400 = vmatmul.mubr.bf16.gmra.mxu0 %v1204_v43  ;;  %v1182_v54 = vmax.f32 %v1124_v45, 0.0  ;;  %2064 = vmatpush3.bf16.msra.mxu1 %v2127_v44 }
 0x202   : > { %v1129_v51 = vpop.f32.mrf.mxu1  ;;  %2025 = vmatpush3.bf16.msra.mxu0 %v2127_v44 }
 0x203   : > { %v1183_v55 = vmax.f32 %v1126_v52, 0.0  ;;  %v1206_v60 = vpack.c.bf16 %v1182_v54, %v1180_v57  ;;  %v1130_v6 = vadd.f32 %v1129_v51, %v2491_v5  ;;  %v2130_v54 = vld [vmem:[%s2681_s5 + $0x20] sm:$0xff]   ;;  %v2133_v57 = vld [vmem:[%s2681_s5 + $0x8] sm:$0xff]  }
 0x204   : > { %v1131_v56 = vpop.f32.mrf.mxu1 }
 0x205   : > { %v1207_v58 = vpack.c.bf16 %v1183_v55, %v1181_v53  ;;  %v1132_v62 = vadd.f32 %v1131_v56, %v2487_v61  ;;  %v1184_v47 = vmax.f32 %v1130_v6, 0.0  ;;  %v2131_v55 = vld [vmem:[%s2681_s5 + $0x18] sm:$0xff]   ;;  %v2132_v56 = vld [vmem:[%s2681_s5 + $0x10] sm:$0xff]  }
 0x206   : > { %v1133_v59 = vpop.f32.mrf.mxu1 }
 0x207   : > { %v1134_v63 = vadd.f32 %v1133_v59, %v2491_v5  ;;  %1407 = vmatprep.mubr.bf16.mxu0 %v1207_v58  ;;  %v1185_v9 = vmax.f32 %v1132_v62, 0.0  ;;  %v2134_v58 = vld [vmem:[%s2681_s5] sm:$0xff]  }
 0x208   : > { %v1135_v0 = vpop.f32.mrf.mxu1  ;;  %v2552_v59 = vld [vmem:[%s2682_s6] ss:$0 sm:$0xff] }
 0x209   : > { %v1136_v7 = vadd.f32 %v1135_v0, %v2487_v61  ;;  %1408 = vmatmul.mubr.bf16.gmra.mxu0 %v1206_v60  ;;  %v1186_v10 = vmax.f32 %v1134_v63, 0.0 }
 0x20a   : > { %v1139_v8 = vpop.f32.mrf.mxu1 }
 0x20b   : > { %v1187_v11 = vmax.f32 %v1136_v7, 0.0  ;;  %v1208_v15 = vpack.c.bf16 %v1186_v10, %v1184_v47  ;;  %v1140_v17 = vadd.f32 %v1139_v8, %v2491_v5 }
 0x20c   : > { %v1141_v12 = vpop.f32.mrf.mxu1 }
 0x20d   : > { %v1209_v13 = vpack.c.bf16 %v1187_v11, %v1185_v9  ;;  %v1142_v16 = vadd.f32 %v1141_v12, %v2487_v61  ;;  %v1188_v25 = vmax.f32 %v1140_v17, 0.0 }
 0x20e   : > { %v1143_v14 = vpop.f32.mrf.mxu1 }
 0x20f   : > { %v1144_v46 = vadd.f32 %v1143_v14, %v2491_v5  ;;  %1415 = vmatprep.mubr.bf16.mxu0 %v1209_v13  ;;  %v1189_v20 = vmax.f32 %v1142_v16, 0.0 }
 0x210   : > { %v1145_v48 = vpop.f32.mrf.mxu1 }
 0x211   : > { %v1146_v18 = vadd.f32 %v1145_v48, %v2487_v61  ;;  %1416 = vmatmul.mubr.bf16.gmra.mxu0 %v1208_v15  ;;  %v1190_v21 = vmax.f32 %v1144_v46, 0.0 }
 0x212   : > { %v1149_v19 = vpop.f32.mrf.mxu1 }
 0x213   : > { %v1191_v23 = vmax.f32 %v1146_v18, 0.0  ;;  %v1210_v2 = vpack.c.bf16 %v1190_v21, %v1188_v25  ;;  %v1150_v29 = vadd.f32 %v1149_v19, %v2491_v5 }
 0x214   : > { %v1151_v24 = vpop.f32.mrf.mxu1 }
 0x215   : > { %v1211_v26 = vpack.c.bf16 %v1191_v23, %v1189_v20  ;;  %v1152_v1 = vadd.f32 %v1151_v24, %v2487_v61  ;;  %v1192_v35 = vmax.f32 %v1150_v29, 0.0 }
 0x216   : > { %v1153_v27 = vpop.f32.mrf.mxu1 }
 0x217   : > { %v1154_v28 = vadd.f32 %v1153_v27, %v2491_v5  ;;  %1423 = vmatprep.mubr.bf16.mxu0 %v1211_v26  ;;  %v1193_v32 = vmax.f32 %v1152_v1, 0.0 }
 0x218   : > { %v1155_v3 = vpop.f32.mrf.mxu1 }
 0x219   : > { %v1156_v30 = vadd.f32 %v1155_v3, %v2487_v61  ;;  %1424 = vmatmul.mubr.bf16.gmra.mxu0 %v1210_v2  ;;  %v1194_v33 = vmax.f32 %v1154_v28, 0.0 }
 0x21a   : > { %v1159_v31 = vpop.f32.mrf.mxu1 }
 0x21b   : > { %v1195_v34 = vmax.f32 %v1156_v30, 0.0  ;;  %v1212_v38 = vpack.c.bf16 %v1194_v33, %v1192_v35  ;;  %v1160_v42 = vadd.f32 %v1159_v31, %v2491_v5 }
 0x21c   : > { %v1161_v4 = vpop.f32.mrf.mxu1 }
 0x21d   : > { %v1213_v36 = vpack.c.bf16 %v1195_v34, %v1193_v32  ;;  %v1162_v39 = vadd.f32 %v1161_v4, %v2487_v61  ;;  %v1196_v52 = vmax.f32 %v1160_v42, 0.0 }
 0x21e   : > { %v1163_v37 = vpop.f32.mrf.mxu1 }
 0x21f   : > { %v1164_v40 = vadd.f32 %v1163_v37, %v2491_v5  ;;  %1431 = vmatprep.mubr.bf16.mxu0 %v1213_v36  ;;  %v1197_v45 = vmax.f32 %v1162_v39, 0.0  ;;  %v2129_v5 = vld [vmem:[%s2681_s5 + $0x28] sm:$0xff]  }
 0x220   : > { %v1165_v41 = vpop.f32.mrf.mxu1 }
 0x221   : > { %v1166_v43 = vadd.f32 %v1165_v41, %v2487_v61  ;;  %1432 = vmatmul.mubr.bf16.gmra.mxu0 %v1212_v38  ;;  %v1198_v49 = vmax.f32 %v1164_v40, 0.0  ;;  %v2128_v61 = vld [vmem:[%s2681_s5 + $0x30] sm:$0xff]  }
 0x222   : > { %2026 = vmatprep.subr.bf16.mxu0 %v2128_v61  ;;  %2057 = vmatprep.subr.bf16.mxu1 %v2128_v61 }
 0x223   : > { %v1199_v50 = vmax.f32 %v1166_v43, 0.0  ;;  %v1214_v53 = vpack.c.bf16 %v1198_v49, %v1196_v52  ;;  %2027 = vmatpush3.bf16.msra.mxu0 %v2128_v61  ;;  %2065 = vmatpush3.bf16.msra.mxu1 %v2128_v61 }
 0x224   : > { %2028 = vmatprep.subr.bf16.mxu0 %v2129_v5  ;;  %2058 = vmatprep.subr.bf16.mxu1 %v2129_v5 }
 0x225   : > { %v1215_v51 = vpack.c.bf16 %v1199_v50, %v1197_v45 }
 0x227   : > { %1439 = vmatprep.mubr.bf16.mxu0 %v1215_v51  ;;  %2029 = vmatpush3.bf16.msra.mxu0 %v2129_v5 }
 0x228   : > { %2066 = vmatpush3.bf16.msra.mxu1 %v2129_v5  ;;  %2030 = vmatprep.subr.bf16.mxu0 %v2130_v54 }
 0x229   : > { %1440 = vmatmul.mubr.bf16.gmra.mxu0 %v1214_v53  ;;  %2059 = vmatprep.subr.bf16.mxu1 %v2130_v54 }
 0x22b   : > { %2031 = vmatpush3.bf16.msra.mxu0 %v2130_v54 }
 0x22c   : > { %2067 = vmatpush3.bf16.msra.mxu1 %v2130_v54  ;;  %2032 = vmatprep.subr.bf16.mxu0 %v2131_v55 }
 0x22d   : > { %2060 = vmatprep.subr.bf16.mxu1 %v2131_v55 }
 0x22f   : > { %2033 = vmatpush3.bf16.msra.mxu0 %v2131_v55 }
 0x230   : > { %2068 = vmatpush3.bf16.msra.mxu1 %v2131_v55  ;;  %2034 = vmatprep.subr.bf16.mxu0 %v2132_v56 }
 0x231   : > { %2061 = vmatprep.subr.bf16.mxu1 %v2132_v56 }
 0x233   : > { %2035 = vmatpush3.bf16.msra.mxu0 %v2132_v56 }
 0x234   : > { %2069 = vmatpush3.bf16.msra.mxu1 %v2132_v56  ;;  %2036 = vmatprep.subr.bf16.mxu0 %v2133_v57 }
 0x235   : > { %2062 = vmatprep.subr.bf16.mxu1 %v2133_v57 }
 0x237   : > { %2037 = vmatpush3.bf16.msra.mxu0 %v2133_v57 }
 0x238   : > { %2070 = vmatpush3.bf16.msra.mxu1 %v2133_v57  ;;  %2038 = vmatprep.subr.bf16.mxu0 %v2134_v58 }
 0x239   : > { %2063 = vmatprep.subr.bf16.mxu1 %v2134_v58 }
 0x23b   : > { %2039 = vmatpush3.bf16.msra.mxu0 %v2134_v58 }
 0x23c   : > { %2071 = vmatpush3.bf16.msra.mxu1 %v2134_v58 }
 0x279   : > { %v2010_v60 = vpop.f32.mrf.mxu0 }
 0x27a   : > { %v899_v62 = vadd.f32 %v2010_v60, %v2552_v59 }
 0x27b   : > { %v890_v63 = vpop.f32.mrf.mxu0 }
 0x27c   : > { %956 = vst.msk [vmem:[%s2559_s25 + $0x10] sm:$0xff] %vm953_vm1, %v899_v62  ;;  %v891_v0 = vadd.f32 %v2552_v59, %v890_v63 }
 0x27d   : > { %v2011_v6 = vpop.f32.mrf.mxu0 }
 0x27e   : > { %954 = vst.msk [vmem:[%s2559_s25] sm:$0xff] %vm953_vm1, %v891_v0  ;;  %v902_v7 = vadd.f32 %v2011_v6, %v2552_v59 }
 0x27f   : > { %v893_v8 = vpop.f32.mrf.mxu0 }
 0x280   : > { %957 = vst.msk [vmem:[%s2559_s25 + $0x18] sm:$0xff] %vm953_vm1, %v902_v7  ;;  %v894_v9 = vadd.f32 %v2552_v59, %v893_v8 }
 0x282   : > { %955 = vst.msk [vmem:[%s2559_s25 + $0x8] sm:$0xff] %vm953_vm1, %v894_v9 }
 0x289   : > { %v2014_v10 = vpop.f32.mrf.mxu0 }
 0x28a   : > { %v915_v11 = vadd.f32 %v2014_v10, %v2552_v59 }
 0x28b   : > { %v906_v12 = vpop.f32.mrf.mxu0 }
 0x28c   : > { %960 = vst.msk [vmem:[%s2559_s25 + $0x30] sm:$0xff] %vm953_vm1, %v915_v11  ;;  %v907_v47 = vadd.f32 %v2552_v59, %v906_v12 }
 0x28d   : > { %v2015_v13 = vpop.f32.mrf.mxu0 }
 0x28e   : > { %958 = vst.msk [vmem:[%s2559_s25 + $0x20] sm:$0xff] %vm953_vm1, %v907_v47  ;;  %v918_v14 = vadd.f32 %v2015_v13, %v2552_v59 }
 0x28f   : > { %v909_v15 = vpop.f32.mrf.mxu0 }
 0x290   : > { %961 = vst.msk [vmem:[%s2559_s25 + $0x38] sm:$0xff] %vm953_vm1, %v918_v14  ;;  %v910_v16 = vadd.f32 %v2552_v59, %v909_v15 }
 0x292   : > { %959 = vst.msk [vmem:[%s2559_s25 + $0x28] sm:$0xff] %vm953_vm1, %v910_v16 }
 0x299   : > { %v2018_v46 = vpop.f32.mrf.mxu0 }
 0x29a   : > { %v931_v48 = vadd.f32 %v2018_v46, %v2552_v59 }
 0x29b   : > { %v922_v17 = vpop.f32.mrf.mxu0 }
 0x29c   : > { %964 = vst.msk [vmem:[%s2559_s25 + $0x50] sm:$0xff] %vm953_vm1, %v931_v48  ;;  %v923_v18 = vadd.f32 %v2552_v59, %v922_v17 }
 0x29d   : > { %v2019_v19 = vpop.f32.mrf.mxu0 }
 0x29e   : > { %962 = vst.msk [vmem:[%s2559_s25 + $0x40] sm:$0xff] %vm953_vm1, %v923_v18  ;;  %v934_v20 = vadd.f32 %v2019_v19, %v2552_v59 }
 0x29f   : > { %v925_v21 = vpop.f32.mrf.mxu0 }
 0x2a0   : > { %965 = vst.msk [vmem:[%s2559_s25 + $0x58] sm:$0xff] %vm953_vm1, %v934_v20  ;;  %v926_v23 = vadd.f32 %v2552_v59, %v925_v21 }
 0x2a2   : > { %963 = vst.msk [vmem:[%s2559_s25 + $0x48] sm:$0xff] %vm953_vm1, %v926_v23 }
 0x2a9   : > { %v2022_v24 = vpop.f32.mrf.mxu0 }
 0x2aa   : > { %v947_v25 = vadd.f32 %v2022_v24, %v2552_v59 }
 0x2ab   : > { %v938_v26 = vpop.f32.mrf.mxu0 }
 0x2ac   : > { %968 = vst.msk [vmem:[%s2559_s25 + $0x70] sm:$0xff] %vm953_vm1, %v947_v25  ;;  %v939_v27 = vadd.f32 %v2552_v59, %v938_v26 }
 0x2ad   : > { %v2023_v2 = vpop.f32.mrf.mxu0 }
 0x2ae   : > { %966 = vst.msk [vmem:[%s2559_s25 + $0x60] sm:$0xff] %vm953_vm1, %v939_v27  ;;  %v950_v1 = vadd.f32 %v2023_v2, %v2552_v59 }
 0x2af   : > { %v941_v28 = vpop.f32.mrf.mxu0 }
 0x2b0   : > { %969 = vst.msk [vmem:[%s2559_s25 + $0x78] sm:$0xff] %vm953_vm1, %v950_v1  ;;  %v942_v3 = vadd.f32 %v2552_v59, %v941_v28 }
 0x2b1   : > { %v1928_v29 = vpop.f32.mrf.mxu0 }
 0x2b2   : > { %967 = vst.msk [vmem:[%s2559_s25 + $0x68] sm:$0xff] %vm953_vm1, %v942_v3 }
 0x2b3   : > { %v1929_v30 = vpop.f32.mrf.mxu0 }
 0x2b4   : > { %v1930_v31 = vadd.f32 %v1929_v30, %v1928_v29 }
 0x2b5   : > { %v1931_v32 = vpop.f32.mrf.mxu0 }
 0x2b6   : > { %v1386_v34 = vadd.f32 %v1930_v31, %v2419_v22 }
 0x2b7   : > { %v1932_v33 = vpop.f32.mrf.mxu0 }
 0x2b8   : > { %v1933_v4 = vadd.f32 %v1932_v33, %v1931_v32  ;;  %v1448_v38 = vmax.f32 %v1386_v34, 0.0 }
 0x2b9   : > { %v1934_v35 = vpop.f32.mrf.mxu0 }
 0x2ba   : > { %v1389_v36 = vadd.f32 %v1933_v4, %v2419_v22 }
 0x2bb   : > { %v1935_v37 = vpop.f32.mrf.mxu0 }
 0x2bc   : > { %v1449_v39 = vmax.f32 %v1389_v36, 0.0  ;;  %v1936_v40 = vadd.f32 %v1935_v37, %v1934_v35 }
 0x2bd   : > { %v1937_v41 = vpop.f32.mrf.mxu0 }
 0x2be   : > { %v1464_v42 = vpack.c.bf16 %v1449_v39, %v1448_v38  ;;  %v1394_v44 = vadd.f32 %v1936_v40, %v2419_v22 }
 0x2bf   : > { %v1938_v43 = vpop.f32.mrf.mxu0 }
 0x2c0   : > { %v1939_v45 = vadd.f32 %v1938_v43, %v1937_v41  ;;  %2040 = vmatprep.mubr.bf16.mxu0 %v1464_v42  ;;  %v1450_v51 = vmax.f32 %v1394_v44, 0.0 }
 0x2c1   : > { %v1940_v49 = vpop.f32.mrf.mxu0 }
 0x2c2   : > { %v1397_v50 = vadd.f32 %v1939_v45, %v2419_v22 }
 0x2c3   : > { %v1941_v52 = vpop.f32.mrf.mxu0 }
 0x2c4   : > { %v1451_v53 = vmax.f32 %v1397_v50, 0.0  ;;  %v1942_v61 = vadd.f32 %v1941_v52, %v1940_v49 }
 0x2c5   : > { %v1943_v5 = vpop.f32.mrf.mxu0 }
 0x2c6   : > { %v1465_v54 = vpack.c.bf16 %v1451_v53, %v1450_v51  ;;  %v1402_v56 = vadd.f32 %v1942_v61, %v2419_v22 }
 0x2c7   : > { %v1944_v55 = vpop.f32.mrf.mxu0 }
 0x2c8   : > { %v1945_v57 = vadd.f32 %v1944_v55, %v1943_v5  ;;  %2041 = vmatmul.mubr.bf16.vlgmr.msra.gmra.mxu0 %v1465_v54  ;;  %v1452_v63 = vmax.f32 %v1402_v56, 0.0 }
 0x2c9   : > { %v1946_v58 = vpop.f32.mrf.mxu0 }
 0x2ca   : > { %v1405_v60 = vadd.f32 %v1945_v57, %v2419_v22 }
 0x2cb   : > { %v1947_v62 = vpop.f32.mrf.mxu0 }
 0x2cc   : > { %v1453_v0 = vmax.f32 %v1405_v60, 0.0  ;;  %v1948_v6 = vadd.f32 %v1947_v62, %v1946_v58 }
 0x2cd   : > { %v1949_v7 = vpop.f32.mrf.mxu0 }
 0x2ce   : > { %v1466_v8 = vpack.c.bf16 %v1453_v0, %v1452_v63  ;;  %v1410_v10 = vadd.f32 %v1948_v6, %v2419_v22 }
 0x2cf   : > { %v1950_v9 = vpop.f32.mrf.mxu0 }
 0x2d0   : > { %v1951_v11 = vadd.f32 %v1950_v9, %v1949_v7  ;;  %2044 = vmatprep.mubr.bf16.mxu1 %v1466_v8  ;;  %v1454_v14 = vmax.f32 %v1410_v10, 0.0 }
 0x2d1   : > { %v1952_v12 = vpop.f32.mrf.mxu0 }
 0x2d2   : > { %v1413_v47 = vadd.f32 %v1951_v11, %v2419_v22 }
 0x2d3   : > { %v1953_v13 = vpop.f32.mrf.mxu0 }
 0x2d4   : > { %v1455_v15 = vmax.f32 %v1413_v47, 0.0  ;;  %v1954_v16 = vadd.f32 %v1953_v13, %v1952_v12 }
 0x2d5   : > { %v1955_v46 = vpop.f32.mrf.mxu0 }
 0x2d6   : > { %v1467_v48 = vpack.c.bf16 %v1455_v15, %v1454_v14  ;;  %v1418_v18 = vadd.f32 %v1954_v16, %v2419_v22 }
 0x2d7   : > { %v1956_v17 = vpop.f32.mrf.mxu0 }
 0x2d8   : > { %v1957_v19 = vadd.f32 %v1956_v17, %v1955_v46  ;;  %2045 = vmatmul.mubr.bf16.vlgmr.msra.gmra.mxu1 %v1467_v48  ;;  %v1456_v24 = vmax.f32 %v1418_v18, 0.0 }
 0x2d9   : > { %v1958_v20 = vpop.f32.mrf.mxu0 }
 0x2da   : > { %v1421_v21 = vadd.f32 %v1957_v19, %v2419_v22 }
 0x2db   : > { %v1959_v23 = vpop.f32.mrf.mxu0 }
 0x2dc   : > { %v1457_v25 = vmax.f32 %v1421_v21, 0.0  ;;  %v1960_v26 = vadd.f32 %v1959_v23, %v1958_v20 }
 0x2dd   : > { %v1961_v27 = vpop.f32.mrf.mxu0 }
 0x2de   : > { %v1468_v2 = vpack.c.bf16 %v1457_v25, %v1456_v24  ;;  %v1426_v28 = vadd.f32 %v1960_v26, %v2419_v22 }
 0x2df   : > { %v1962_v1 = vpop.f32.mrf.mxu0 }
 0x2e0   : > { %v1963_v3 = vadd.f32 %v1962_v1, %v1961_v27  ;;  %2048 = vmatprep.mubr.bf16.mxu1 %v1468_v2  ;;  %v1458_v32 = vmax.f32 %v1426_v28, 0.0 }
 0x2e1   : > { %v1964_v29 = vpop.f32.mrf.mxu0 }
 0x2e2   : > { %v1429_v30 = vadd.f32 %v1963_v3, %v2419_v22 }
 0x2e3   : > { %v1965_v31 = vpop.f32.mrf.mxu0 }
 0x2e4   : > { %v1459_v33 = vmax.f32 %v1429_v30, 0.0  ;;  %v1966_v34 = vadd.f32 %v1965_v31, %v1964_v29 }
 0x2e5   : > { %v1967_v4 = vpop.f32.mrf.mxu0 }
 0x2e6   : > { %v1469_v35 = vpack.c.bf16 %v1459_v33, %v1458_v32  ;;  %v1434_v37 = vadd.f32 %v1966_v34, %v2419_v22 }
 0x2e7   : > { %v1968_v36 = vpop.f32.mrf.mxu0 }
 0x2e8   : > { %v1969_v38 = vadd.f32 %v1968_v36, %v1967_v4  ;;  %2049 = vmatmul.mubr.bf16.gmra.mxu1 %v1469_v35  ;;  %v1460_v42 = vmax.f32 %v1434_v37, 0.0 }
 0x2e9   : > { %v1970_v39 = vpop.f32.mrf.mxu0 }
 0x2ea   : > { %v1437_v40 = vadd.f32 %v1969_v38, %v2419_v22 }
 0x2eb   : > { %v1971_v41 = vpop.f32.mrf.mxu0 }
 0x2ec   : > { %v1461_v43 = vmax.f32 %v1437_v40, 0.0  ;;  %v1972_v44 = vadd.f32 %v1971_v41, %v1970_v39 }
 0x2ed   : > { %v1973_v45 = vpop.f32.mrf.mxu0 }
 0x2ee   : > { %v1470_v49 = vpack.c.bf16 %v1461_v43, %v1460_v42  ;;  %v1442_v52 = vadd.f32 %v1972_v44, %v2419_v22 }
 0x2ef   : > { %v1974_v50 = vpop.f32.mrf.mxu0 }
 0x2f0   : > { %v1975_v51 = vadd.f32 %v1974_v50, %v1973_v45  ;;  %2052 = vmatprep.mubr.bf16.mxu1 %v1470_v49  ;;  %v1462_v61 = vmax.f32 %v1442_v52, 0.0 }
 0x2f2   : > { %v1445_v53 = vadd.f32 %v1975_v51, %v2419_v22 }
 0x2f4   : > { %v1463_v5 = vmax.f32 %v1445_v53, 0.0 }
 0x2f6   : > { %v1471_v54 = vpack.c.bf16 %v1463_v5, %v1462_v61 }
 0x2f8   : > { %2053 = vmatmul.mubr.bf16.gmra.mxu1 %v1471_v54 }
 0x388   : > { %v2042_v55 = vpop.f32.mrf.mxu0 }
 0x389   : > { %v1586_v56 = vadd.f32 %v2042_v55, %v2552_v59 }
 0x38a   : > { %v1577_v57 = vpop.f32.mrf.mxu0 }
 0x38b   : > { %1816 = vst.msk [vmem:[%s2559_s25 + $0x90] sm:$0xff] %vm953_vm1, %v1586_v56  ;;  %v1578_v58 = vadd.f32 %v2552_v59, %v1577_v57 }
 0x38c   : > { %v2043_v60 = vpop.f32.mrf.mxu0 }
 0x38d   : > { %1814 = vst.msk [vmem:[%s2559_s25 + $0x80] sm:$0xff] %vm953_vm1, %v1578_v58  ;;  %v1589_v22 = vadd.f32 %v2043_v60, %v2552_v59 }
 0x38e   : > { %v1580_v62 = vpop.f32.mrf.mxu0 }
 0x38f   : > { %1817 = vst.msk [vmem:[%s2559_s25 + $0x98] sm:$0xff] %vm953_vm1, %v1589_v22  ;;  %v1581_v63 = vadd.f32 %v2552_v59, %v1580_v62 }
 0x391   : > { %1815 = vst.msk [vmem:[%s2559_s25 + $0x88] sm:$0xff] %vm953_vm1, %v1581_v63 }
 0x398   : > { %v2046_v0 = vpop.f32.mrf.mxu1 }
 0x399   : > { %v1602_v6 = vadd.f32 %v2046_v0, %v2552_v59 }
 0x39a   : > { %v1593_v7 = vpop.f32.mrf.mxu1 }
 0x39b   : > { %1820 = vst.msk [vmem:[%s2559_s25 + $0xb0] sm:$0xff] %vm953_vm1, %v1602_v6  ;;  %v1594_v8 = vadd.f32 %v2552_v59, %v1593_v7 }
 0x39c   : > { %v2047_v9 = vpop.f32.mrf.mxu1 }
 0x39d   : > { %1818 = vst.msk [vmem:[%s2559_s25 + $0xa0] sm:$0xff] %vm953_vm1, %v1594_v8  ;;  %v1605_v10 = vadd.f32 %v2047_v9, %v2552_v59 }
 0x39e   : > { %v1596_v11 = vpop.f32.mrf.mxu1 }
 0x39f   : > { %1821 = vst.msk [vmem:[%s2559_s25 + $0xb8] sm:$0xff] %vm953_vm1, %v1605_v10  ;;  %v1597_v12 = vadd.f32 %v2552_v59, %v1596_v11 }
 0x3a1   : > { %1819 = vst.msk [vmem:[%s2559_s25 + $0xa8] sm:$0xff] %vm953_vm1, %v1597_v12 }
 0x3a8   : > { %v2050_v47 = vpop.f32.mrf.mxu1 }
 0x3a9   : > { %v1618_v13 = vadd.f32 %v2050_v47, %v2552_v59 }
 0x3aa   : > { %v1609_v14 = vpop.f32.mrf.mxu1 }
 0x3ab   : > { %1824 = vst.msk [vmem:[%s2559_s25 + $0xd0] sm:$0xff] %vm953_vm1, %v1618_v13  ;;  %v1610_v15 = vadd.f32 %v2552_v59, %v1609_v14 }
 0x3ac   : > { %v2051_v16 = vpop.f32.mrf.mxu1 }
 0x3ad   : > { %1822 = vst.msk [vmem:[%s2559_s25 + $0xc0] sm:$0xff] %vm953_vm1, %v1610_v15  ;;  %v1621_v46 = vadd.f32 %v2051_v16, %v2552_v59 }
 0x3ae   : > { %v1612_v48 = vpop.f32.mrf.mxu1 }
 0x3af   : > { %1825 = vst.msk [vmem:[%s2559_s25 + $0xd8] sm:$0xff] %vm953_vm1, %v1621_v46  ;;  %v1613_v17 = vadd.f32 %v2552_v59, %v1612_v48 }
 0x3b1   : > { %1823 = vst.msk [vmem:[%s2559_s25 + $0xc8] sm:$0xff] %vm953_vm1, %v1613_v17 }
 0x3b8   : > { %v2054_v18 = vpop.f32.mrf.mxu1 }
 0x3b9   : > { %v1634_v19 = vadd.f32 %v2054_v18, %v2552_v59 }
 0x3ba   : > { %v1625_v20 = vpop.f32.mrf.mxu1 }
 0x3bb   : > { %1828 = vst.msk [vmem:[%s2559_s25 + $0xf0] sm:$0xff] %vm953_vm1, %v1634_v19  ;;  %v1626_v21 = vadd.f32 %v2552_v59, %v1625_v20 }
 0x3bc   : > { %v2055_v23 = vpop.f32.mrf.mxu1 }
 0x3bd   : > { %1826 = vst.msk [vmem:[%s2559_s25 + $0xe0] sm:$0xff] %vm953_vm1, %v1626_v21  ;;  %v1637_v24 = vadd.f32 %v2055_v23, %v2552_v59 }
 0x3be   : > { %v1628_v25 = vpop.f32.mrf.mxu1 }
 0x3bf   : > { %1829 = vst.msk [vmem:[%s2559_s25 + $0xf8] sm:$0xff] %vm953_vm1, %v1637_v24  ;;  %v1629_v26 = vadd.f32 %v2552_v59, %v1628_v25 }
 0x3c1   : > { %1827 = vst.msk [vmem:[%s2559_s25 + $0xe8] sm:$0xff] %vm953_vm1, %v1629_v26 }
 0x3c2 PF: > { %s17_s24 = sadd.s32 1, %s2141_s24  }
 0x3c3   : > { %p14_p4 = scmp.ge.s32.totalorder %s17_s24, 4  }
 0x3c5   :  { %16 = sbr.rel (!%p14_p4) target bundleno = 1 (0x1), region = 80 }

</bundles_post_ra>
